<compile_context>
chip_gen: v7x
topology: tpu7x:2x2x1
jax: 0.10.0
libtpu: 0.0.40
codegen_flags: <defaults>
</compile_context>

<pallas_src>
import jax
import jax.numpy as jnp
from jax.experimental import pallas as pl
from jax.experimental.pallas import tpu as pltpu


def _op1_kernel(x_ref, o_ref):
    # forward: x = exp(sin(x**2) + 1), computed in f32, cast at the store.
    x = x_ref[...].astype(jnp.float32)
    o_ref[...] = jnp.exp(jnp.sin(x * x) + 1.0).astype(o_ref.dtype)


_LANE = 128
_TARGET_BLOCK_BYTES = 2 * 1024 * 1024   # ~2 MiB input block per grid step
_VMEM_LIMIT_BYTES = 32 * 1024 * 1024    # explicit, portable across v5e/v6e/v7x
_SMALL_N_BYPASS = 256 * 1024            # below this, plain XLA elementwise wins
_MIN_GRID = 4                           # >= 2 steps per TensorCore on v7x

# Sublane quantum by itemsize: sub-32-bit dtypes pack 2/4 rows per sublane.
_SUBLANE_FOR_ITEMSIZE = {4: 8, 2: 16, 1: 32}


def _op1_jnp(x):
    """Plain-JAX reference path (also used for small inputs and ragged tails)."""
    xf = x.astype(jnp.float32)
    return jnp.exp(jnp.sin(xf * xf) + 1.0).astype(x.dtype)


def _pick_cols(n: int, subl: int):
    """Widest lane-dense column count dividing n (prefer >= subl rows)."""
    for c in (1024, 512, 256, 128):
        if n % c == 0 and n // c >= subl:
            return c
    for c in (1024, 512, 256, 128):
        if n % c == 0:
            return c
    return None


def _pick_tile_rows(rows: int, cols: int, itemsize: int, subl: int) -> int:
    """Block rows: ~2 MiB per step, sublane-aligned, >= _MIN_GRID steps if possible."""
    if rows <= subl:
        return rows
    tile_r = max(subl, (_TARGET_BLOCK_BYTES // (cols * itemsize)) // subl * subl)
    # Keep enough grid steps that v7x's two TensorCores both get work.
    max_tile_for_grid = -(-rows // _MIN_GRID)
    max_tile_for_grid = max(subl, max_tile_for_grid // subl * subl)
    tile_r = min(tile_r, max_tile_for_grid, rows)
    return tile_r


def _op1_pallas_2d(x2d, rows, cols, dtype, itemsize, subl, donate):
    tile_r = _pick_tile_rows(rows, cols, itemsize, subl)
    grid = (pl.cdiv(rows, tile_r),)
    extra = {"input_output_aliases": {0: 0}} if donate else {}
    return pl.pallas_call(
        _op1_kernel,
        out_shape=jax.ShapeDtypeStruct((rows, cols), dtype),
        grid=grid,
        in_specs=[pl.BlockSpec((tile_r, cols), lambda i: (i, 0))],
        out_specs=pl.BlockSpec((tile_r, cols), lambda i: (i, 0)),
        compiler_params=pltpu.CompilerParams(
            dimension_semantics=("parallel",),
            vmem_limit_bytes=_VMEM_LIMIT_BYTES,
        ),
        cost_estimate=pl.CostEstimate(
            flops=3 * rows * cols,
            transcendentals=2 * rows * cols,
            bytes_accessed=2 * rows * cols * itemsize,
        ),
        **extra,
    )(x2d)


def operator1(x: jax.Array, *, force_pallas: bool = False,
              donate_input: bool = False) -> jax.Array:
    """Elementwise exp(sin(x^2) + 1), matching Operator1.forward."""
    orig_shape = x.shape
    dtype = x.dtype
    n = x.size
    if n == 0:
        return x
    itemsize = jnp.dtype(dtype).itemsize
    subl = _SUBLANE_FOR_ITEMSIZE.get(itemsize, 8)

    # Tiny tensors: custom-call launch + pipeline prologue dominate; let XLA
    # fuse the elementwise chain instead.
    if not force_pallas and n < _SMALL_N_BYPASS:
        return _op1_jnp(x)

    flat = x.reshape(-1)
    cols = _pick_cols(n, subl)

    if cols is not None:
        # Fast path: zero-copy 2D reshape covers every element (typical NCHW).
        rows = n // cols
        out2d = _op1_pallas_2d(flat.reshape(rows, cols), rows, cols,
                               dtype, itemsize, subl, donate_input)
        return out2d.reshape(orig_shape)

    # Ragged path: bulk through the kernel, < 128-element tail via jnp epilogue.
    # No HBM pad pass and no post-slice pass over the padded slab.
    n_bulk = (n // _LANE) * _LANE
    if n_bulk == 0:
        return _op1_jnp(x)
    cols_b = _pick_cols(n_bulk, subl)  # always succeeds: n_bulk % 128 == 0
    rows_b = n_bulk // cols_b
    out_bulk = _op1_pallas_2d(flat[:n_bulk].reshape(rows_b, cols_b), rows_b,
                              cols_b, dtype, itemsize, subl, False).reshape(-1)
    out_tail = _op1_jnp(flat[n_bulk:])
    return jnp.concatenate([out_bulk, out_tail]).reshape(orig_shape)


if __name__ == "__main__":
    key = jax.random.PRNGKey(0)
    k1, k2 = jax.random.split(key)

    def ref(v):
        vf = v.astype(jnp.float32)
        return jnp.exp(jnp.sin(vf ** 2) + 1.0).astype(v.dtype)

    # Small NCHW input consistent with Operator1 usage.
    x = jax.random.normal(k1, (2, 4, 16, 16), dtype=jnp.float32)

    # 1) Default wrapper path (small-input bypass).
    out = jax.block_until_ready(operator1(x))
    assert out.shape == x.shape and out.dtype == x.dtype
    assert jnp.allclose(out, ref(x), atol=1e-5, rtol=1e-5)

    # 2) Force the Pallas fast path (128-divisible element count).
    out_p = jax.block_until_ready(operator1(x, force_pallas=True))
    assert out_p.shape == x.shape and out_p.dtype == x.dtype
    assert jnp.allclose(out_p, ref(x), atol=1e-5, rtol=1e-5)

    # 3) Ragged element count -> bulk kernel (partial last block) + jnp tail.
    x_ragged = jax.random.normal(k2, (3, 5, 7, 11), dtype=jnp.float32)  # 1155 elems
    out_r = jax.block_until_ready(operator1(x_ragged, force_pallas=True))
    assert out_r.shape == x_ragged.shape and out_r.dtype == x_ragged.dtype
    assert jnp.allclose(out_r, ref(x_ragged), atol=1e-5, rtol=1e-5)

    print("KERNEL_OK")
</pallas_src>

<mosaic_0001>
module attributes {stable_mosaic.version = 11 : i64} {
  func.func @_op1_kernel(%arg0: i32, %arg1: memref<8x256xf32, #tpu.memory_space<vmem>>, %arg2: memref<8x256xf32, #tpu.memory_space<vmem>>) attributes {dimension_semantics = [#tpu.dimension_semantics<parallel>], iteration_bounds = array<i64: 1>, scalar_prefetch = 0 : i64, scratch_operands = 0 : i64, tpu.core_type = #tpu.core_type<tc>, window_params = [{transform_indices = @transform_0, window_bounds = array<i64: 8, 256>}, {transform_indices = @transform_1, window_bounds = array<i64: 8, 256>}]} {
    %c0 = arith.constant 0 : index
    %c0_0 = arith.constant 0 : index
    %0 = vector.load %arg1[%c0, %c0_0] : memref<8x256xf32, #tpu.memory_space<vmem>>, vector<8x256xf32>
    %1 = arith.mulf %0, %0 : vector<8x256xf32>
    %2 = math.sin %1 : vector<8x256xf32>
    %cst = arith.constant 1.000000e+00 : f32
    %3 = vector.broadcast %cst : f32 to vector<8x256xf32>
    %4 = arith.addf %2, %3 : vector<8x256xf32>
    %5 = math.exp %4 : vector<8x256xf32>
    %c0_1 = arith.constant 0 : index
    %c0_2 = arith.constant 0 : index
    %6 = vector.load %arg2[%c0_1, %c0_2] : memref<8x256xf32, #tpu.memory_space<vmem>>, vector<8x256xf32>
    tpu.vector_store %arg2[%c0_1, %c0_2], %5 {strides = array<i32>} : memref<8x256xf32, #tpu.memory_space<vmem>>, vector<8x256xf32>,
    return
  }
  func.func @transform_0(%arg0: i32) -> (i32, i32) {
    %c0_i32 = arith.constant 0 : i32
    %c0_i32_0 = arith.constant 0 : i32
    return %arg0, %c0_i32 : i32, i32
  }
  func.func @transform_1(%arg0: i32) -> (i32, i32) {
    %c0_i32 = arith.constant 0 : i32
    %c0_i32_0 = arith.constant 0 : i32
    return %arg0, %c0_i32 : i32, i32
  }
}

</mosaic_0001>

<bundles_post_ra>
// kernel: tpu_custom_call.1
= control target key start
LH: loop header
LB: loop body
LE: loop exit
PB: predicated region body
PF: predicated region fallthrough
CT: control target
= control target key end

     0   :  { %6 = vsyncpa [#allocation3], 0  ;;  %s452_s0 = inlined_call_operand.hbm [shape: f32[8,256], index: 0, kind: input, shape index: {}]   ;;  %s453_s1 = inlined_call_operand.hbm [shape: f32[8,256], index: 1, kind: output, shape index: {}]  }
   0x1   :  { %7 = vsyncpa [#allocation4], 0  ;;  %s340_s6 = smov [#allocation2]   ;;  %s292_s10 = scalar_lea.hbm %s452_s0, 256 }
   0x2   :  { %s14_s7 = sshll.u32 %s340_s6, 4  ;;  %p293_p0 = scmp.ne.s32.totalorder %s452_s0, %s292_s10  ;;  %s15_s7 = int_to_ptr.vmem [resolvable:$true] %s14_s7 }
   0x3   :  { %p296_p1 = scmp.lt.u32.totalorder %s292_s10, %s452_s0 }
   0x5   :  { %p298_p2 = pnand %p296_p1, %p293_p0 }
   0x7   :  { %301 = shalt.err (!%p298_p2)
}
   0x8   :  { %s302_s15 = scalar_lea.vmem %s15_s7, 256  ;;  %p307_p4 = scmp.lt.s32.totalorder %s15_s7, %s15_s7 }
   0x9   :  { %p303_p3 = scmp.ne.s32.totalorder %s15_s7, %s302_s15  ;;  %p308_p5 = scmp.lt.s32.totalorder %s302_s15, %s302_s15 }
   0xb   :  { %p309_p6 = por %p308_p5, %p307_p4 }
   0xd   :  { %p310_p7 = pnand %p309_p6, %p303_p3 }
   0xf   :  { %313 = shalt.err (!%p310_p7)
}
  0x10   :  { %17 = dma.hbm_to_vmem [thread:$0]  %s452_s0, 256, %s15_s7, [#allocation3]  }
  0x11   :  { %336 = dma.done.wait [#allocation3], 256  }
  0x12   :  { %337 = vsyncadd [#allocation3], 4294967040  ;;  %v21_v0 = vld [vmem:[#allocation2] sm:$0xff]  ;;  %v22_v1 = vld [vmem:[#allocation2 + $0x8] sm:$0xff]  ;;  %v341_v26 = vmov 683565275  }
  0x13   :  { %v370_v2 = vmul.f32 %v21_v0, %v21_v0  ;;  %v372_v3 = vmul.f32 %v22_v1, %v22_v1  ;;  %v342_v28 = vmov 2475754826   ;;  %v343_v30 = vmov 2131351028   ;;  %s347_s0 = smov [#allocation5]  }
  0x14   :  { %v344_v32 = vmov 2102212464   ;;  %v345_v34 = vmov 920167782   ;;  %v346_v42 = vmov 1326507024  }
  0x15   :  { %v25_v4 = vand.u32 2147483647, %v370_v2  ;;  %v28_v5 = vand.u32 2139095040, %v370_v2  ;;  %v129_v6 = vand.u32 2147483647, %v372_v3  ;;  %v132_v7 = vand.u32 2139095040, %v372_v3 }
  0x16   :  { %vm27_vm14 = vcmp.lt.s32.totalorder %v370_v2, 0  ;;  %s247_s18 = sshll.u32 %s347_s0, 4  ;;  %s248_s18 = int_to_ptr.vmem [resolvable:$true] %s247_s18 }
  0x17   :  { %v29_v8 = vshrl.u32 %v28_v5, 23  ;;  %v32_v9 = vand.u32 8388607, %v25_v4  ;;  %v133_v10 = vshrl.u32 %v132_v7, 23  ;;  %v136_v11 = vand.u32 8388607, %v129_v6  ;;  %p319_p9 = scmp.lt.s32.totalorder %s248_s18, %s248_s18 }
  0x18   :  { %vm26_vm15 = vcmp.le.f32.partialorder %v25_v4, 0.7853982  ;;  %s314_s19 = scalar_lea.vmem %s248_s18, 256 }
  0x19   :  { %v256_v12 = vadd.s32 4294967169, %v29_v8  ;;  %v260_v13 = vadd.s32 4294967169, %v133_v10  ;;  %v33_v15 = vor.u32 8388608, %v32_v9  ;;  %v137_v16 = vor.u32 8388608, %v136_v11  ;;  %p315_p8 = scmp.ne.s32.totalorder %s248_s18, %s314_s19  ;;  %p320_p10 = scmp.lt.s32.totalorder %s314_s19, %s314_s19 }
  0x1b   :  { %v35_v14 = vadd.s32 1, %v256_v12  ;;  %v139_v17 = vadd.s32 1, %v260_v13  ;;  %v382_v22 = vshll.u32 %v33_v15, 8  ;;  %v384_v24 = vshll.u32 %v137_v16, 8  ;;  %p321_p11 = por %p320_p10, %p319_p9 }
  0x1d   :  { %vm36_vm0 = vcmp.gt.s32.totalorder %v35_v14, 0  ;;  %vm140_vm1 = vcmp.gt.s32.totalorder %v139_v17, 0  ;;  %p322_p12 = pnand %p321_p11, %p315_p8 }
  0x1e   :  { %v37_v18 = vsel %vm36_vm0, %v35_v14, 0  ;;  %v141_v21 = vsel %vm140_vm1, %v139_v17, 0  ;;  %vm131_vm0 = vcmp.lt.s32.totalorder %v372_v3, 0  ;;  %vm130_vm1 = vcmp.le.f32.partialorder %v129_v6, 0.7853982 }
  0x1f   :  { %v38_v19 = vshrl.u32 %v37_v18, 5  ;;  %v39_v20 = vand.u32 31, %v37_v18  ;;  %v143_v23 = vand.u32 31, %v141_v21  ;;  %v386_v36 = vshrl.u32 %v141_v21, 5 }
  0x21   :  { %v40_v25 = vsub.s32 32, %v39_v20  ;;  %v42_v27 = vshll.u32 %v341_v26, %v39_v20  ;;  %v45_v29 = vshll.u32 %v342_v28, %v39_v20  ;;  %v48_v31 = vshll.u32 %v343_v30, %v39_v20 }
  0x22   :  { %v51_v33 = vshll.u32 %v344_v32, %v39_v20  ;;  %v54_v35 = vshll.u32 %v345_v34, %v39_v20  ;;  %vm57_vm2 = vcmp.lt.s32.totalorder %v38_v19, 1  ;;  %vm58_vm3 = vcmp.lt.s32.totalorder %v38_v19, 2 }
  0x23   :  { %v41_v37 = vshrl.u32 %v341_v26, %v40_v25  ;;  %v43_v38 = vshrl.u32 %v342_v28, %v40_v25  ;;  %v46_v39 = vshrl.u32 %v343_v30, %v40_v25  ;;  %v49_v40 = vshrl.u32 %v344_v32, %v40_v25 }
  0x24   :  { %v52_v41 = vshrl.u32 %v345_v34, %v40_v25  ;;  %v55_v43 = vshrl.u32 %v346_v42, %v40_v25  ;;  %vm60_vm4 = vcmp.lt.s32.totalorder %v38_v19, 4  ;;  %v144_v47 = vsub.s32 32, %v143_v23 }
  0x25   :  { %v44_v44 = vor.u32 %v43_v38, %v42_v27  ;;  %v47_v45 = vor.u32 %v46_v39, %v45_v29  ;;  %v50_v46 = vor.u32 %v49_v40, %v48_v31  ;;  %vm59_vm5 = vcmp.lt.s32.totalorder %v38_v19, 3 }
  0x26   :  { %v53_v48 = vor.u32 %v52_v41, %v51_v33  ;;  %v56_v49 = vor.u32 %v55_v43, %v54_v35  ;;  %v146_v50 = vshll.u32 %v341_v26, %v143_v23  ;;  %v149_v58 = vshll.u32 %v342_v28, %v143_v23 }
  0x27   :  { %v61_v51 = vsel %vm57_vm2, %v41_v37, %v44_v44  ;;  %v62_v52 = vsel %vm60_vm4, %v50_v46, 2102212464  ;;  %v65_v53 = vsel %vm57_vm2, %v44_v44, %v47_v45  ;;  %v69_v54 = vsel %vm57_vm2, %v47_v45, %v50_v46 }
  0x28   :  { %v63_v55 = vsel %vm59_vm5, %v47_v45, %v62_v52  ;;  %v66_v56 = vsel %vm60_vm4, %v53_v48, 920167782  ;;  %v70_v57 = vsel %vm60_vm4, %v56_v49, 1326507024  ;;  %v145_v61 = vshrl.u32 %v341_v26, %v144_v47 }
  0x29   :  { %v67_v59 = vsel %vm59_vm5, %v50_v46, %v66_v56  ;;  %v71_v60 = vsel %vm59_vm5, %v53_v48, %v70_v57  ;;  %v147_v62 = vshrl.u32 %v342_v28, %v144_v47  ;;  %v64_v63 = vsel %vm58_vm3, %v61_v51, %v63_v55 }
  0x2a   :  { %v68_v0 = vsel %vm58_vm3, %v65_v53, %v67_v59  ;;  %v72_v1 = vsel %vm58_vm3, %v69_v54, %v71_v60  ;;  %v150_v5 = vshrl.u32 %v343_v30, %v144_v47  ;;  %v152_v13 = vshll.u32 %v343_v30, %v143_v23 }
  0x2b   :  { %v395_v7 = vmul.u32.u64.low %v382_v22, %v72_v1  ;;  %v396_v8 = vmul.u32.u64.high %v382_v22, %v72_v1, %v395_v7  ;;  %v399_v9 = vmul.u32.u64.low %v382_v22, %v68_v0  ;;  %v400_v10 = vmul.u32.u64.high %v382_v22, %v68_v0, %v399_v9 }
  0x2c   :  { %v148_v11 = vor.u32 %v147_v62, %v146_v50  ;;  %v151_v12 = vor.u32 %v150_v5, %v149_v58  ;;  %v153_v14 = vshrl.u32 %v344_v32, %v144_v47  ;;  %v155_v15 = vshll.u32 %v344_v32, %v143_v23 }
  0x2d   :  { %v156_v16 = vshrl.u32 %v345_v34, %v144_v47  ;;  %v158_v17 = vshll.u32 %v345_v34, %v143_v23  ;;  %v159_v18 = vshrl.u32 %v346_v42, %v144_v47  ;;  %v80_v19 = vmul.u32 %v382_v22, %v64_v63 }
  0x2e   :  { %v154_v20 = vor.u32 %v153_v14, %v152_v13  ;;  %vm161_vm6 = vcmp.lt.s32.totalorder %v386_v36, 1  ;;  %vm162_vm7 = vcmp.lt.s32.totalorder %v386_v36, 2  ;;  %vm82_vm8 = vc.u32 %v396_v8, %v399_v9 }
  0x2f   :  { %v83_v21 = vadd.s32 1, %v400_v10  ;;  %v157_v25 = vor.u32 %v156_v16, %v155_v15  ;;  %vm163_vm9 = vcmp.lt.s32.totalorder %v386_v36, 3  ;;  %v160_v26 = vor.u32 %v159_v18, %v158_v17 }
  0x30   :  { %vm164_vm10 = vcmp.lt.s32.totalorder %v386_v36, 4  ;;  %v165_v27 = vsel %vm161_vm6, %v145_v61, %v148_v11  ;;  %v169_v23 = vsel %vm161_vm6, %v148_v11, %v151_v12  ;;  %v173_v30 = vsel %vm161_vm6, %v151_v12, %v154_v20 }
  0x31   :  { %v84_v28 = vsel %vm82_vm8, %v83_v21, %v400_v10  ;;  %v166_v22 = vsel %vm164_vm10, %v154_v20, 2102212464  ;;  %v170_v29 = vsel %vm164_vm10, %v157_v25, 920167782  ;;  %v174_v34 = vsel %vm164_vm10, %v160_v26, 1326507024 }
  0x32   :  { %v85_v31 = vadd.s32 %v84_v28, %v80_v19  ;;  %v167_v32 = vsel %vm163_vm9, %v151_v12, %v166_v22  ;;  %v171_v33 = vsel %vm163_vm9, %v154_v20, %v170_v29  ;;  %v175_v38 = vsel %vm163_vm9, %v157_v25, %v174_v34 }
  0x33   :  { %v168_v35 = vsel %vm162_vm7, %v165_v27, %v167_v32  ;;  %v172_v37 = vsel %vm162_vm7, %v169_v23, %v171_v33  ;;  %v176_v40 = vsel %vm162_vm7, %v173_v30, %v175_v38  ;;  %v81_v59 = vadd.s32 %v399_v9, %v396_v8 }
  0x34   :  { %v86_v39 = vadd.s32 536870912, %v85_v31  ;;  %v417_v41 = vmul.u32.u64.low %v384_v24, %v172_v37  ;;  %v418_v42 = vmul.u32.u64.high %v384_v24, %v172_v37, %v417_v41  ;;  %v184_v46 = vmul.u32 %v384_v24, %v168_v35 }
  0x35   :  { %v421_v43 = vmul.u32.u64.low %v384_v24, %v176_v40  ;;  %v422_v44 = vmul.u32.u64.high %v384_v24, %v176_v40, %v421_v43  ;;  %vm117_vm5 = vweird.f32 %v370_v2  ;;  %vm221_vm9 = vweird.f32 %v372_v3 }
  0x36   :  { %v87_v45 = vshrl.u32 %v86_v39, 30  ;;  %v187_v48 = vadd.s32 1, %v418_v42 }
  0x37   :  { %vm186_vm11 = vc.u32 %v422_v44, %v417_v41  ;;  %v185_v15 = vadd.s32 %v417_v41, %v422_v44 }
  0x38   :  { %v88_v47 = vshll.u32 %v87_v45, 30  ;;  %v188_v36 = vsel %vm186_vm11, %v187_v48, %v418_v42  ;;  %v111_v8 = vsub.s32 4, %v87_v45 }
  0x39   :  { %v189_v50 = vadd.s32 %v188_v36, %v184_v46 }
  0x3a   :  { %v89_v49 = vsub.s32 %v85_v31, %v88_v47  ;;  %v112_v27 = vsel %vm27_vm14, %v111_v8, %v87_v45 }
  0x3b   :  { %v190_v52 = vadd.s32 536870912, %v189_v50  ;;  %v114_v30 = vsel %vm26_vm15, 0, %v112_v27 }
  0x3c   :  { %v91_v51 = vsub.s32 0, %v89_v49  ;;  %v118_v35 = vadd.s32 3, %v114_v30 }
  0x3d   :  { %v191_v54 = vshrl.u32 %v190_v52, 30 }
  0x3e   :  { %v257_v53 = vmin.u32 %v91_v51, %v89_v49  ;;  %v119_v39 = vand.u32 3, %v118_v35 }
  0x3f   :  { %v192_v56 = vshll.u32 %v191_v54, 30  ;;  %v215_v34 = vsub.s32 4, %v191_v54 }
  0x40   :  { %v93_v55 = vclz %v257_v53  ;;  %vm124_vm2 = vcmp.eq.s32.totalorder %v119_v39, 2  ;;  %vm121_vm3 = vcmp.eq.s32.totalorder %v119_v39, 0  ;;  %vm120_vm4 = vcmp.lt.s32.totalorder %v119_v39, 2 }
  0x41   :  { %v193_v58 = vsub.s32 %v189_v50, %v192_v56  ;;  %v216_v38 = vsel %vm131_vm0, %v215_v34, %v191_v54 }
  0x42   :  { %v258_v57 = vadd.s32 4294967294, %v93_v55  ;;  %v218_v42 = vsel %vm130_vm1, 0, %v216_v38 }
  0x43   :  { %v195_v60 = vsub.s32 0, %v193_v58  ;;  %v222_v46 = vadd.s32 3, %v218_v42 }
  0x44   :  { %vm259_vm12 = vcmp.lt.s32.totalorder %v258_v57, 0 }
  0x45   :  { %v96_v24 = vsel %vm259_vm12, 0, %v258_v57  ;;  %v261_v0 = vmin.u32 %v195_v60, %v193_v58  ;;  %v223_v36 = vand.u32 3, %v222_v46 }
  0x46   :  { %v97_v61 = vsub.s32 32, %v96_v24  ;;  %v98_v62 = vshll.u32 %v89_v49, %v96_v24  ;;  %v101_v63 = vsub.s32 4294967266, %v96_v24 }
  0x47   :  { %v197_v7 = vclz %v261_v0  ;;  %vm228_vm6 = vcmp.eq.s32.totalorder %v223_v36, 2  ;;  %vm225_vm7 = vcmp.eq.s32.totalorder %v223_v36, 0  ;;  %vm224_vm8 = vcmp.lt.s32.totalorder %v223_v36, 2 }
  0x48   :  { %v99_v1 = vshrl.u32 %v81_v59, %v97_v61  ;;  %v102_v5 = vadd.s32 127, %v101_v63 }
  0x49   :  { %v262_v12 = vadd.s32 4294967294, %v197_v7 }
  0x4a   :  { %v100_v10 = vor.u32 %v99_v1, %v98_v62  ;;  %v103_v11 = vshll.u32 %v102_v5, 23 }
  0x4b   :  { %vm263_vm13 = vcmp.lt.s32.totalorder %v262_v12, 0 }
  0x4c   :  { %v104_v13 = vor.u32 4788187, %v103_v11  ;;  %v107_v14 = vcvt.s32.f32 %v100_v10  ;;  %v200_v9 = vsel %vm263_vm13, 0, %v262_v12 }
  0x4d   :  { %v201_v17 = vsub.s32 32, %v200_v9  ;;  %v202_v18 = vshll.u32 %v193_v58, %v200_v9  ;;  %v205_v19 = vsub.s32 4294967266, %v200_v9 }
  0x4e   :  { %v105_v16 = vand.u32 2147483647, %v104_v13 }
  0x4f   :  { %v203_v21 = vshrl.u32 %v185_v15, %v201_v17  ;;  %v206_v25 = vadd.s32 127, %v205_v19 }
  0x50   :  { %v108_v20 = vmul.f32 %v107_v14, %v105_v16 }
  0x51   :  { %v204_v23 = vor.u32 %v203_v21, %v202_v18  ;;  %v207_v28 = vshll.u32 %v206_v25, 23 }
  0x52   :  { %v109_v26 = vxor.u32 2147483648, %v108_v20 }
  0x53   :  { %v208_v31 = vor.u32 4788187, %v207_v28  ;;  %v211_v32 = vcvt.s32.f32 %v204_v23 }
  0x54   :  { %v110_v22 = vsel %vm27_vm14, %v109_v26, %v108_v20 }
  0x55   :  { %v113_v29 = vsel %vm26_vm15, %v370_v2, %v110_v22  ;;  %v209_v33 = vand.u32 2147483647, %v208_v31 }
  0x56   :  { %280 = vcosq.f32 %v113_v29 }
  0x57   :  { %282 = vsinq.f32 %v113_v29  ;;  %v212_v37 = vmul.f32 %v211_v32, %v209_v33 }
  0x59   :  { %v213_v4 = vxor.u32 2147483648, %v212_v37 }
  0x5b   :  { %v214_v40 = vsel %vm131_vm0, %v213_v4, %v212_v37 }
  0x5c   :  { %v217_v41 = vsel %vm130_vm1, %v372_v3, %v214_v40 }
  0x5d   :  { %284 = vcosq.f32 %v217_v41 }
  0x5e   :  { %286 = vsinq.f32 %v217_v41 }
  0x60   :  { %v281_v43 = vpop.eup %280 }
  0x61   :  { %v283_v44 = vpop.eup %282  ;;  %v125_v45 = vxor.u32 2147483648, %v281_v43 }
  0x62   :  { %v122_v47 = vxor.u32 2147483648, %v283_v44 }
  0x63   :  { %v126_v6 = vsel %vm124_vm2, %v125_v45, %v283_v44 }
  0x64   :  { %v123_v48 = vsel %vm121_vm3, %v281_v43, %v122_v47 }
  0x65   :  { %v127_v49 = vsel %vm120_vm4, %v123_v48, %v126_v6 }
  0x66   :  { %v128_v50 = vsel %vm117_vm5, nan, %v127_v49 }
  0x67   :  { %v233_v51 = vadd.f32 1.0, %v128_v50  ;;  %v285_v52 = vpop.eup %284 }
  0x68   :  { %v287_v54 = vpop.eup %286  ;;  %v229_v55 = vxor.u32 2147483648, %v285_v52 }
  0x69   :  { %v235_v53 = vmul.f32 1.442695, %v233_v51  ;;  %v226_v56 = vxor.u32 2147483648, %v287_v54 }
  0x6a   :  { %v230_v57 = vsel %vm228_vm6, %v229_v55, %v287_v54 }
  0x6b   :  { %288 = vpow2.f32 %v235_v53  ;;  %v227_v58 = vsel %vm225_vm7, %v285_v52, %v226_v56 }
  0x6c   :  { %v231_v2 = vsel %vm224_vm8, %v227_v58, %v230_v57 }
  0x6d   :  { %v232_v59 = vsel %vm221_vm9, nan, %v231_v2 }
  0x6e   :  { %v234_v24 = vadd.f32 1.0, %v232_v59 }
  0x70   :  { %v237_v60 = vmul.f32 1.442695, %v234_v24 }
  0x72   :  { %290 = vpow2.f32 %v237_v60 }
  0x75   :  { %v289_v61 = vpop.eup %288 }
  0x76   :  { %239 = vst [vmem:[#allocation5] sm:$0xff] %v289_v61 }
  0x7c   :  { %v291_v62 = vpop.eup %290 }
  0x7d   :  { %240 = vst [vmem:[#allocation5 + $0x8] sm:$0xff] %v291_v62 }
  0x7e   :  { %325 = shalt.err (!%p322_p12)
}
  0x7f   :  { %s326_s22 = scalar_lea.hbm %s453_s1, 256 }
  0x80   :  { %p327_p13 = scmp.ne.s32.totalorder %s453_s1, %s326_s22  ;;  %p330_p0 = scmp.lt.u32.totalorder %s326_s22, %s453_s1 }
  0x82   :  { %p332_p1 = pnand %p330_p0, %p327_p13 }
  0x84   :  { %335 = shalt.err (!%p332_p1)
}
  0x85   :  { %250 = dma.vmem_to_hbm [thread:$0]  %s248_s18, 256, %s453_s1, [#allocation4]  }
  0x86   :  { %338 = dma.done.wait [#allocation4], 256  }
  0x87   :  { %339 = vsyncadd [#allocation4], 4294967040 }
  0x88   :  { %254 = vsyncpa [#allocation3], 1 }
  0x89   :  { %255 = vsyncpa [#allocation4], 1 }

</bundles_post_ra>
